<compile_context>
chip_gen: v6e
topology: v6e:2x2x1
jax: 0.10.0
libtpu: 0.0.40
codegen_flags: <defaults>
</compile_context>

<pallas_src>
import functools

import jax
import jax.numpy as jnp
from jax.experimental import pallas as pl
from jax.experimental.pallas import tpu as pltpu


_SMALL_FALLBACK_ELEMS = 512 * 1024        # below this, fused XLA reduce wins
_TARGET_BLOCK_BYTES = 8 * 1024 * 1024     # ~8 MiB input blocks (double-buffered)
_VMEM_LIMIT_FLOOR = 24 << 20
_VMEM_LIMIT_CEIL = 56 << 20               # stay under v7x's 64 MiB physical VMEM


def _min_identity(dtype):
    """Identity element of the min reduction for `dtype`."""
    dtype = jnp.dtype(dtype)
    if jnp.issubdtype(dtype, jnp.floating):
        return jnp.asarray(jnp.inf, dtype)
    if jnp.issubdtype(dtype, jnp.integer):
        return jnp.asarray(jnp.iinfo(dtype).max, dtype)
    if dtype == jnp.bool_:
        return jnp.asarray(True, dtype)
    raise TypeError(f"unsupported dtype for min reduction: {dtype}")


def _cores_per_chip():
    """Best-effort TensorCores-per-chip detection (v7x has 2); defaults to 1."""
    try:
        info = pltpu.get_tpu_info()
        for name in ("num_cores", "core_count", "tensor_core_count",
                     "num_tensorcores"):
            v = getattr(info, name, None)
            if v:
                return int(v)
    except Exception:
        pass
    try:
        kind = jax.devices()[0].device_kind.lower()
        if "v7" in kind or "tpu7" in kind or "7x" in kind:
            return 2
    except Exception:
        pass
    return 1


def _choose_tiles(B, S, H, itemsize, block_s=None):
    """Pick (tB, tS, tH): sublane-aligned S tiles, lane-dense H tiles, ~8 MiB blocks."""
    if itemsize >= 4:
        s_mult = 8
    elif itemsize == 2:
        s_mult = 16
    else:
        s_mult = 32

    # tB is either the full B (<8) or 8 — keeps the (8, 128) output block legal.
    tB = min(B, 8)
    tH = H

    # Guard: huge H would force block bytes far past the target even with the
    # minimum S tile; tile H in 128-lane multiples instead of over-subscribing VMEM.
    if tB * s_mult * tH * itemsize > _TARGET_BLOCK_BYTES and H > 128:
        tH = max(128,
                 (_TARGET_BLOCK_BYTES // (tB * s_mult * itemsize)) // 128 * 128)

    # Megacore helper (v7x only): if B alone yields <2 parallel blocks, split H
    # so the second TensorCore has work. No effect on single-TC chips.
    if _cores_per_chip() >= 2 and tH == H and H >= 256 and pl.cdiv(B, tB) < 2:
        tH = max(128, (H // 2) // 128 * 128)

    per_row = max(1, tB * tH * itemsize)
    if block_s is not None:
        tS = S if block_s >= S else max(s_mult, (block_s // s_mult) * s_mult)
    else:
        tS = max(s_mult, (_TARGET_BLOCK_BYTES // per_row) // s_mult * s_mult)
        if tS >= S:
            tS = S  # full-extent block is always legal
    return tB, tS, tH


def _min_readout_kernel(seq_ref, out_ref, *, s_total, block_s):
    # seq_ref: (tB, tS, tH) VMEM block; out_ref: (tB, tH) resident accumulator.
    s_idx = pl.program_id(2)
    ident = _min_identity(out_ref.dtype)

    @pl.when(s_idx == 0)
    def _init():
        out_ref[...] = jnp.full(out_ref.shape, ident, out_ref.dtype)

    def _accumulate(x):
        out_ref[...] = jnp.minimum(out_ref[...], jnp.min(x, axis=1))

    if s_total % block_s != 0:
        # A padded S-tail exists: only the LAST S block pays the iota/select
        # mask; every other step stays on the cheap vreg-wise min path.
        last_s = pl.num_programs(2) - 1

        @pl.when(s_idx != last_s)
        def _body():
            _accumulate(seq_ref[...])

        @pl.when(s_idx == last_s)
        def _tail():
            x = seq_ref[...]
            row = jax.lax.broadcasted_iota(jnp.int32, x.shape, dimension=1)
            valid = s_total - s_idx * block_s
            _accumulate(jnp.where(row < valid, x, ident))
    else:
        _accumulate(seq_ref[...])


def min_readout(seq: jax.Array, *, block_s=None,
                force_pallas: bool = False) -> jax.Array:
    """Min over axis 1 of a (B, S, H) array (torch.min(seq, 1).values)."""
    B, S, H = seq.shape

    # Tiny inputs: launch + un-fusable custom-call overhead dwarfs the DMA time.
    if not force_pallas and seq.size <= _SMALL_FALLBACK_ELEMS:
        return jnp.min(seq, axis=1)

    itemsize = jnp.dtype(seq.dtype).itemsize
    tB, tS, tH = _choose_tiles(B, S, H, itemsize, block_s)
    grid = (pl.cdiv(B, tB), pl.cdiv(H, tH), pl.cdiv(S, tS))

    kernel = functools.partial(_min_readout_kernel, s_total=S, block_s=tS)

    # Explicit scoped-VMEM budget from the actual blocks (double-buffered input
    # + resident output), clamped between v5e's default (16 MiB) and v7x's
    # physical ceiling (64 MiB).
    block_in = tB * tS * tH * itemsize
    block_out = tB * tH * itemsize
    vmem_limit = int(min(_VMEM_LIMIT_CEIL,
                         max(_VMEM_LIMIT_FLOOR,
                             2 * block_in + 2 * block_out + (2 << 20))))

    cost = pl.CostEstimate(
        flops=B * S * H,
        transcendentals=0,
        bytes_accessed=B * S * H * itemsize + B * H * itemsize,
    )

    return pl.pallas_call(
        kernel,
        out_shape=jax.ShapeDtypeStruct((B, H), seq.dtype),
        grid_spec=pltpu.PrefetchScalarGridSpec(
            num_scalar_prefetch=0,
            grid=grid,
            in_specs=[pl.BlockSpec((tB, tS, tH), lambda b, h, s: (b, s, h))],
            out_specs=pl.BlockSpec((tB, tH), lambda b, h, s: (b, h)),
        ),
        compiler_params=pltpu.CompilerParams(
            dimension_semantics=("parallel", "parallel", "arbitrary"),
            vmem_limit_bytes=vmem_limit),
        cost_estimate=cost,
    )(seq)


if __name__ == "__main__":
    key = jax.random.PRNGKey(0)
    k1, k2, k3 = jax.random.split(key, 3)

    # Small shape implied by the module: (batch=2, seq=8, hidden=32).
    B, S, H = 2, 8, 32
    seq_small = jax.random.normal(k1, (B, S, H), dtype=jnp.float32)
    out_small = min_readout(seq_small, force_pallas=True)  # exercise the kernel
    jax.block_until_ready(out_small)
    assert out_small.shape == (B, H), out_small.shape
    assert jnp.array_equal(out_small, jnp.min(seq_small, axis=1)), "small mismatch"

    # Larger shape: exercises the (B, H, S) tiled grid, B-edge blocks, and the
    # gated masked S-tail path (200 % 64 != 0).
    B2, S2, H2 = 10, 200, 128
    seq_big = jax.random.normal(k2, (B2, S2, H2), dtype=jnp.float32)
    out_big = min_readout(seq_big, block_s=64, force_pallas=True)
    jax.block_until_ready(out_big)
    assert out_big.shape == (B2, H2), out_big.shape
    assert jnp.array_equal(out_big, jnp.min(seq_big, axis=1)), "tiled mismatch"

    # bf16: exercises the 16-row sublane multiple and the bf16 tail mask.
    B3, S3, H3 = 4, 300, 256
    seq_bf16 = jax.random.normal(k3, (B3, S3, H3), dtype=jnp.bfloat16)
    out_bf16 = min_readout(seq_bf16, block_s=128, force_pallas=True)
    jax.block_until_ready(out_bf16)
    assert out_bf16.shape == (B3, H3), out_bf16.shape
    assert jnp.array_equal(out_bf16, jnp.min(seq_bf16, axis=1)), "bf16 mismatch"

    # Default wrapper path (tiny-input fallback to jnp.min).
    out_fb = min_readout(seq_small)
    jax.block_until_ready(out_fb)
    assert jnp.array_equal(out_fb, jnp.min(seq_small, axis=1)), "fallback mismatch"

    print("KERNEL_OK")
</pallas_src>

<mosaic_0001>
module attributes {stable_mosaic.version = 11 : i64} {
  func.func @_min_readout_kernel(%arg0: i32, %arg1: i32, %arg2: i32, %arg3: memref<2x8x32xf32, #tpu.memory_space<vmem>>, %arg4: memref<2x32xf32, #tpu.memory_space<vmem>>) attributes {dimension_semantics = [#tpu.dimension_semantics<parallel>, #tpu.dimension_semantics<parallel>, #tpu.dimension_semantics<arbitrary>], iteration_bounds = array<i64: 1, 1, 1>, scalar_prefetch = 0 : i64, scratch_operands = 0 : i64, tpu.core_type = #tpu.core_type<tc>, window_params = [{transform_indices = @transform_0, window_bounds = array<i64: 2, 8, 32>}, {transform_indices = @transform_1, window_bounds = array<i64: 2, 32>}]} {
    %c0_i32 = arith.constant 0 : i32
    %0 = arith.cmpi eq, %arg2, %c0_i32 : i32
    %1 = arith.extui %0 : i1 to i32
    %cst = arith.constant 0x7F800000 : f32
    %c0_i32_0 = arith.constant 0 : i32
    %2 = arith.cmpi ne, %1, %c0_i32_0 : i32
    scf.if %2 {
      %8 = vector.broadcast %cst : f32 to vector<2x32xf32>
      %c0_8 = arith.constant 0 : index
      %c0_9 = arith.constant 0 : index
      %9 = vector.load %arg4[%c0_8, %c0_9] : memref<2x32xf32, #tpu.memory_space<vmem>>, vector<2x32xf32>
      tpu.vector_store %arg4[%c0_8, %c0_9], %8 {strides = array<i32>} : memref<2x32xf32, #tpu.memory_space<vmem>>, vector<2x32xf32>,
    } else {
    }
    %c0 = arith.constant 0 : index
    %c0_1 = arith.constant 0 : index
    %c0_2 = arith.constant 0 : index
    %3 = vector.load %arg3[%c0, %c0_1, %c0_2] : memref<2x8x32xf32, #tpu.memory_space<vmem>>, vector<2x8x32xf32>
    %c0_3 = arith.constant 0 : index
    %c0_4 = arith.constant 0 : index
    %4 = vector.load %arg4[%c0_3, %c0_4] : memref<2x32xf32, #tpu.memory_space<vmem>>, vector<2x32xf32>
    %cst_5 = arith.constant dense<0x7F800000> : vector<2x32xf32>
    %5 = vector.multi_reduction <minimumf>, %3, %cst_5 [1] : vector<2x8x32xf32> to vector<2x32xf32>
    %6 = arith.minimumf %4, %5 : vector<2x32xf32>
    %c0_6 = arith.constant 0 : index
    %c0_7 = arith.constant 0 : index
    %7 = vector.load %arg4[%c0_6, %c0_7] : memref<2x32xf32, #tpu.memory_space<vmem>>, vector<2x32xf32>
    tpu.vector_store %arg4[%c0_6, %c0_7], %6 {strides = array<i32>} : memref<2x32xf32, #tpu.memory_space<vmem>>, vector<2x32xf32>,
    return
  }
  func.func @transform_0(%arg0: i32, %arg1: i32, %arg2: i32) -> (i32, i32, i32) {
    %c0_i32 = arith.constant 0 : i32
    return %arg0, %arg2, %arg1 : i32, i32, i32
  }
  func.func @transform_1(%arg0: i32, %arg1: i32, %arg2: i32) -> (i32, i32) {
    %c0_i32 = arith.constant 0 : i32
    return %arg0, %arg1 : i32, i32
  }
}

</mosaic_0001>

<bundles_post_ra>
// kernel: tpu_custom_call.1
= control target key start
LH: loop header
LB: loop body
LE: loop exit
PB: predicated region body
PF: predicated region fallthrough
CT: control target
= control target key end

     0   :  { %6 = vsyncpa [#allocation3], 0  ;;  %s142_s0 = inlined_call_operand.hbm [shape: f32[2,8,32], index: 0, kind: input, shape index: {}]   ;;  %s143_s1 = inlined_call_operand.hbm [shape: f32[2,32], index: 1, kind: output, shape index: {}]  }
   0x1   :  { %7 = vsyncpa [#allocation4], 0  ;;  %s119_s6 = smov [#allocation2]  }
   0x2   :  { %s13_s7 = sshll.u32 %s119_s6, 4  ;;  %s14_s7 = int_to_ptr.vmem [resolvable:$true] %s13_s7 }
   0x3   :  { %s83_s8 = scalar_lea.vmem %s14_s7, 256  ;;  %p88_p1 = scmp.lt.s32.totalorder %s14_s7, %s14_s7 }
   0x4   :  { %p84_p0 = scmp.ne.s32.totalorder %s14_s7, %s83_s8  ;;  %p89_p2 = scmp.lt.s32.totalorder %s83_s8, %s83_s8 }
   0x6   :  { %p90_p3 = por %p89_p2, %p88_p1 }
   0x8   :  { %p91_p4 = pnand %p90_p3, %p84_p0 }
   0xa   :  { %94 = shalt.err (!%p91_p4)
}
   0xb   :  { %s120_s9 = smov 128   ;;  %s121_s10 = smov 8  }
   0xc   :  { %19 = dma.hbm_to_vmem [thread:$0]  %s142_s0, 256, %s14_s7, [#allocation3], %s120_s9, %s120_s9, %s121_s10  }
   0xd   :  { %115 = dma.done.wait [#allocation3], 256  }
   0xe   :  { %116 = vsyncadd [#allocation3], 4294967040  ;;  %vm27_vm0 = vcmask 254976   ;;  %v122_v0 = vmov inf   ;;  %vm32_vm1 = vcmask 261120   ;;  %v29_v1 = vld [vmem:[#allocation2] sm:$0xff] }
   0xf   :  { %28 = vst.msk [vmem:[#allocation5] sm:$0x3] %vm27_vm0, %v122_v0  ;;  %v30_v2 = vld [vmem:[#allocation2 + $0x8] sm:$0xff]  ;;  %v33_v3 = vsel %vm32_vm1, %v29_v1, inf  ;;  %vm49_vm2 = vcmask 1041409   ;;  %s123_s0 = smov [#allocation5]  }
  0x10   :  { %v40_v4 = vsel %vm32_vm1, %v30_v2, inf  ;;  %v34_v5 = vrot.slane %v33_v3, 4  ;;  %s61_s13 = sshll.u32 %s123_s0, 4  ;;  %s62_s13 = int_to_ptr.vmem [resolvable:$true] %s61_s13 }
  0x11   :  { %v41_v6 = vrot.slane %v40_v4, 4  ;;  %s95_s14 = scalar_lea.vmem %s62_s13, 32  ;;  %p100_p6 = scmp.lt.s32.totalorder %s62_s13, %s62_s13 }
  0x12   :  { %v35_v7 = vmin.f32 %v33_v3, %v34_v5  ;;  %p96_p5 = scmp.ne.s32.totalorder %s62_s13, %s95_s14  ;;  %p101_p7 = scmp.lt.s32.totalorder %s95_s14, %s95_s14 }
  0x13   :  { %v42_v8 = vmin.f32 %v40_v4, %v41_v6 }
  0x14   :  { %v36_v9 = vrot.slane %v35_v7, 2  ;;  %p102_p8 = por %p101_p7, %p100_p6 }
  0x15   :  { %v43_v10 = vrot.slane %v42_v8, 2 }
  0x16   :  { %v37_v11 = vmin.f32 %v35_v7, %v36_v9  ;;  %v31_v15 = vld [vmem:[#allocation5] sm:$0x3]  ;;  %p103_p9 = pnand %p102_p8, %p96_p5 }
  0x17   :  { %v44_v12 = vmin.f32 %v42_v8, %v43_v10 }
  0x18   :  { %v38_v13 = vrot.slane %v37_v11, 1 }
  0x19   :  { %v45_v14 = vrot.slane %v44_v12, 1 }
  0x1a   :  { %v39_v16 = vmin.f32 %v37_v11, %v38_v13 }
  0x1b   :  { %v46_v17 = vmin.f32 %v44_v12, %v45_v14 }
  0x1d   :  { %v50_v18 = vsel %vm49_vm2, %v46_v17, %v39_v16 }
  0x1e   :  { %v52_v19 = vmin.f32 %v31_v15, %v50_v18 }
  0x20   :  { %54 = vst.msk [vmem:[#allocation5] sm:$0x3] %vm27_vm0, %v52_v19 }
  0x21   :  { %106 = shalt.err (!%p103_p9)
}
  0x22   :  { %64 = dma.vmem_to_hbm [thread:$0]  %s62_s13, 32, %s143_s1, [#allocation4]  }
  0x23   :  { %117 = dma.done.wait [#allocation4], 32  }
  0x24   :  { %118 = vsyncadd [#allocation4], 4294967264 }
  0x25   :  { %68 = vsyncpa [#allocation3], 1 }
  0x26   :  { %69 = vsyncpa [#allocation4], 1 }

</bundles_post_ra>
